<compile_context>
chip_gen: v6e
topology: v6e:2x2x1
jax: 0.10.0
libtpu: 0.0.40
codegen_flags: <defaults>
</compile_context>

<pallas_src>
import functools

import jax
import jax.numpy as jnp
from jax.experimental import pallas as pl
from jax.experimental.pallas import tpu as pltpu


def _round_up(x, m):
    return ((x + m - 1) // m) * m


def _cdiv(a, b):
    return -(-a // b)


def _spec(block_shape, index_map, *, single_buffered=False):
    """BlockSpec; resident (constant index_map) operands request a single buffer
    instead of the default double buffer, halving their VMEM footprint."""
    if single_buffered:
        try:
            return pl.BlockSpec(block_shape, index_map,
                                pipeline_mode=pl.Buffered(1))
        except (TypeError, ValueError, AttributeError):
            pass  # fall back to default buffering on older Pallas versions
    return pl.BlockSpec(block_shape, index_map)


def dense_fc_kernel(x_ref, w_ref, b_ref, o_ref, *, compute_dtype):
    """One (tm, tn) output tile of (features @ W + b).

    x_ref: (tm, K) feature rows        -- streamed per row-tile step
    w_ref: (K, tn) weight column tile  -- resident when grid_n == 1
    b_ref: (1, tn) f32 bias tile       -- broadcasts over the tm rows
    o_ref: (tm, tn) output tile        -- written once, lane-dense
    """
    x = x_ref[...]
    w = w_ref[...]
    if compute_dtype is not None and jnp.dtype(compute_dtype) != x.dtype:
        # In-kernel cast: HBM traffic stays at the stored dtype while the MXU
        # runs at native bf16 rate on v6e/v7x (a wrapper-side astype would add
        # a full extra HBM read+write pass over `features`).
        x = x.astype(compute_dtype)
        w = w.astype(compute_dtype)
    acc = jnp.dot(x, w, preferred_element_type=jnp.float32)  # f32 accumulation
    o_ref[...] = (acc + b_ref[...]).astype(o_ref.dtype)


def _choose_tiles(M, K, N, x_bytes, w_bytes, o_bytes, vmem_budget):
    """Pick (tm, tn) so worst-case (2x-buffered) VMEM use stays within budget."""

    def usage(tm, tn):
        # Conservative: every operand accounted at 2 buffers, even though the
        # resident weight/bias request Buffered(1) when grid_n == 1.
        return (2 * tm * K * x_bytes       # streamed feature rows
                + 2 * K * tn * w_bytes     # weight tile
                + 2 * tn * 4               # f32 bias tile
                + 2 * tm * tn * o_bytes)   # output tile

    # Row tile: big enough that each grid step moves >= ~2 MiB of feature bytes
    # (amortizes ~0.35 us per-step pipeline overhead); capped at 4096 rows.
    tm = _round_up(min(max(256, _cdiv(2 << 20, K * x_bytes)), 4096), 8)
    # Keep >= ~4 row tiles when M is large so the "parallel" axes can shard
    # across v7x's two TensorCores (a single-step grid idles one TC).
    if M > 1024:
        tm = min(tm, _round_up(_cdiv(M, 4), 8))
    if tm >= M:
        tm = M                      # full-dim block is always legal
    tn = N                          # try to keep the whole weight resident

    # Shrink to the VMEM budget: first tile N (caps the resident weight; tn is a
    # multiple of 128 so stores stay lane-dense), then shrink the row tile.
    while usage(tm, tn) > vmem_budget:
        if tn > 128:
            tn = max(128, _round_up(tn // 2, 128))
        elif tm > 8:
            tm = max(8, _round_up(tm // 2, 8))
        else:
            break  # degenerate (huge K); vmem_limit_bytes below still covers it
    return tm, tn, usage(tm, tn)


def dense_fully_connected(features, weight, bias, *, compute_dtype=None,
                          vmem_budget_bytes=32 << 20):
    """filtered_features = features @ weight_matrix + bias.

    compute_dtype:     optional in-kernel MXU cast (e.g. jnp.bfloat16 on v6e/v7x);
                       accumulation stays f32 and the output keeps the input dtype.
    vmem_budget_bytes: cap on worst-case VMEM usage driving the tm/tn tile choice
                       (32 MiB default fits v5e/v6e/v7x comfortably).
    """
    M, K = features.shape
    K2, N = weight.shape
    assert K == K2 and bias.shape == (N,)

    out_dtype = features.dtype
    x_bytes = jnp.dtype(features.dtype).itemsize
    w_bytes = jnp.dtype(weight.dtype).itemsize
    o_bytes = jnp.dtype(out_dtype).itemsize

    bias2d = bias.astype(jnp.float32).reshape(1, N)  # (1, N), broadcasts over rows

    # NOTE: out_channels that are a multiple of 128 keep every store lane-dense
    # (unmasked vst); other N still work via full-dim / masked partial tiles.
    tm, tn, vmem_usage = _choose_tiles(M, K, N, x_bytes, w_bytes, o_bytes,
                                       vmem_budget_bytes)
    grid_n = _cdiv(N, tn)
    grid_m = _cdiv(M, tm)
    resident = grid_n == 1  # whole weight/bias stay in VMEM across the grid

    # Grid order: N tiles outer, row tiles inner -> each (K, tn) weight tile is
    # DMA'd once per N tile while the feature rows stream through it.
    grid = (grid_n, grid_m)

    in_specs = [
        pl.BlockSpec((tm, K), lambda j, i: (i, 0)),                        # rows
        _spec((K, tn), lambda j, i: (0, j), single_buffered=resident),     # weight
        _spec((1, tn), lambda j, i: (0, j), single_buffered=resident),     # bias
    ]
    out_specs = pl.BlockSpec((tm, tn), lambda j, i: (i, j))

    cost = pl.CostEstimate(
        flops=2 * M * N * K,
        transcendentals=0,
        bytes_accessed=(grid_n * M * K * x_bytes + K * N * w_bytes
                        + N * 4 + M * N * o_bytes),
    )

    return pl.pallas_call(
        functools.partial(dense_fc_kernel, compute_dtype=compute_dtype),
        out_shape=jax.ShapeDtypeStruct((M, N), out_dtype),
        grid_spec=pltpu.PrefetchScalarGridSpec(
            num_scalar_prefetch=0,
            grid=grid,
            in_specs=in_specs,
            out_specs=out_specs,
        ),
        compiler_params=pltpu.CompilerParams(
            dimension_semantics=("parallel", "parallel"),
            # Explicit scoped-VMEM limit: the 16/32 MiB default can silently block
            # the intended tiling; worst-case usage + 2 MiB headroom (floor 16 MiB).
            vmem_limit_bytes=int(max(vmem_usage + (2 << 20), 16 << 20)),
        ),
        cost_estimate=cost,
    )(features, weight, bias2d)


def init_params(key, in_channels, out_channels, dtype=jnp.float32):
    """Deterministic init mirroring the module's __init__.

    - weight_matrix: xavier_uniform_ over (in_channels, out_channels)
    - bias: uniform(-1/sqrt(out_channels), 1/sqrt(out_channels))
    """
    kw, kb = jax.random.split(key)
    limit_w = jnp.sqrt(6.0 / (in_channels + out_channels))
    weight = jax.random.uniform(
        kw, (in_channels, out_channels), dtype, minval=-limit_w, maxval=limit_w
    )
    limit_b = 1.0 / jnp.sqrt(jnp.asarray(out_channels, dtype))
    bias = jax.random.uniform(
        kb, (out_channels,), dtype, minval=-limit_b, maxval=limit_b
    )
    return weight, bias


if __name__ == "__main__":
    key = jax.random.PRNGKey(0)
    k_feat, k_param = jax.random.split(key)

    num_nodes = 200      # deliberately not a multiple of 128 (partial-tile path)
    in_channels = 256
    out_channels = 256   # lane-aligned (multiple of 128) -> unmasked stores

    features = jax.random.normal(k_feat, (num_nodes, in_channels), jnp.float32)
    weight, bias = init_params(k_param, in_channels, out_channels)
    ref = features @ weight + bias

    # 1) Default f32 path: resident weight, single-buffered.
    out = jax.block_until_ready(dense_fully_connected(features, weight, bias))
    assert out.shape == (num_nodes, out_channels)
    assert jnp.allclose(out, ref, atol=1e-4, rtol=1e-4)

    # 2) In-kernel bf16 cast for v6e/v7x MXU rate (f32 accumulation kept).
    out_bf16 = jax.block_until_ready(
        dense_fully_connected(features, weight, bias, compute_dtype=jnp.bfloat16)
    )
    assert jnp.allclose(out_bf16, ref, atol=5e-2, rtol=5e-2)

    # 3) Tiny VMEM budget forces the N-tiled fallback path (grid_n > 1).
    out_tiled = jax.block_until_ready(
        dense_fully_connected(features, weight, bias, vmem_budget_bytes=1 << 20)
    )
    assert jnp.allclose(out_tiled, ref, atol=1e-4, rtol=1e-4)

    print("KERNEL_OK")
</pallas_src>

<mosaic_0001>
module attributes {stable_mosaic.version = 11 : i64} {
  func.func @dense_fc_kernel(%arg0: i32, %arg1: i32, %arg2: memref<200x256xf32, #tpu.memory_space<vmem>>, %arg3: memref<256x256xf32, #tpu.memory_space<vmem>>, %arg4: memref<1x256xf32, #tpu.memory_space<vmem>>, %arg5: memref<200x256xf32, #tpu.memory_space<vmem>>) attributes {dimension_semantics = [#tpu.dimension_semantics<parallel>, #tpu.dimension_semantics<parallel>], iteration_bounds = array<i64: 1, 1>, scalar_prefetch = 0 : i64, scratch_operands = 0 : i64, tpu.core_type = #tpu.core_type<tc>, window_params = [{transform_indices = @transform_0, window_bounds = array<i64: 200, 256>}, {pipeline_mode = #tpu.pipeline_mode<synchronous>, transform_indices = @transform_1, window_bounds = array<i64: 256, 256>}, {pipeline_mode = #tpu.pipeline_mode<synchronous>, transform_indices = @transform_2, window_bounds = array<i64: 1, 256>}, {transform_indices = @transform_3, window_bounds = array<i64: 200, 256>}]} {
    %c0 = arith.constant 0 : index
    %c0_0 = arith.constant 0 : index
    %0 = vector.load %arg2[%c0, %c0_0] : memref<200x256xf32, #tpu.memory_space<vmem>>, vector<200x256xf32>
    %c0_1 = arith.constant 0 : index
    %c0_2 = arith.constant 0 : index
    %1 = vector.load %arg3[%c0_1, %c0_2] : memref<256x256xf32, #tpu.memory_space<vmem>>, vector<256x256xf32>
    %cst = arith.constant dense<0.000000e+00> : vector<200x256xf32>
    %2 = tpu.matmul %0, %1, %cst {dimension_numbers = #tpu.dot_dimension_numbers<[1], [0], [0], [1], [0, 0, 1, 1], [], []>} : vector<200x256xf32>, vector<256x256xf32>, vector<200x256xf32> -> vector<200x256xf32>
    %c0_3 = arith.constant 0 : index
    %c0_4 = arith.constant 0 : index
    %3 = vector.load %arg4[%c0_3, %c0_4] : memref<1x256xf32, #tpu.memory_space<vmem>>, vector<1x256xf32>
    %4 = vector.broadcast %3 : vector<1x256xf32> to vector<200x256xf32>
    %5 = arith.addf %2, %4 : vector<200x256xf32>
    %c0_5 = arith.constant 0 : index
    %c0_6 = arith.constant 0 : index
    %6 = vector.load %arg5[%c0_5, %c0_6] : memref<200x256xf32, #tpu.memory_space<vmem>>, vector<200x256xf32>
    tpu.vector_store %arg5[%c0_5, %c0_6], %5 {strides = array<i32>} : memref<200x256xf32, #tpu.memory_space<vmem>>, vector<200x256xf32>,
    return
  }
  func.func @transform_0(%arg0: i32, %arg1: i32) -> (i32, i32) {
    %c0_i32 = arith.constant 0 : i32
    %c0_i32_0 = arith.constant 0 : i32
    return %arg1, %c0_i32 : i32, i32
  }
  func.func @transform_1(%arg0: i32, %arg1: i32) -> (i32, i32) {
    %c0_i32 = arith.constant 0 : i32
    %c0_i32_0 = arith.constant 0 : i32
    return %c0_i32, %arg0 : i32, i32
  }
  func.func @transform_2(%arg0: i32, %arg1: i32) -> (i32, i32) {
    %c0_i32 = arith.constant 0 : i32
    %c0_i32_0 = arith.constant 0 : i32
    return %c0_i32, %arg0 : i32, i32
  }
  func.func @transform_3(%arg0: i32, %arg1: i32) -> (i32, i32) {
    %c0_i32 = arith.constant 0 : i32
    return %arg1, %arg0 : i32, i32
  }
}

</mosaic_0001>

<bundles_post_ra>
// kernel: tpu_custom_call.1
= control target key start
LH: loop header
LB: loop body
LE: loop exit
PB: predicated region body
PF: predicated region fallthrough
CT: control target
= control target key end

     0   :  { %8 = vsyncpa [#allocation3], 0  ;;  %s687_s0 = inlined_call_operand.hbm [shape: f32[200,256], index: 0, kind: input, shape index: {}]   ;;  %s688_s1 = inlined_call_operand.hbm [shape: f32[256,256], index: 1, kind: input, shape index: {}]   ;;  %s689_s2 = inlined_call_operand.vmem [shape: f32[1,256], index: 2, kind: input, shape index: {}]   ;;  %s690_s3 = inlined_call_operand.hbm [shape: f32[200,256], index: 3, kind: output, shape index: {}]  }
   0x1   :  { %9 = vsyncpa [#allocation6], 0 }
   0x2   :  { %10 = vsyncpa [#allocation4], 0  ;;  %s587_s12 = smov [#allocation2]  }
   0x3   :  { %s16_s13 = sshll.u32 %s587_s12, 4  ;;  %s17_s13 = int_to_ptr.vmem [resolvable:$true] %s16_s13 }
   0x4   :  { %s529_s14 = scalar_lea.vmem %s17_s13, 6400  ;;  %p534_p1 = scmp.lt.s32.totalorder %s17_s13, %s17_s13 }
   0x5   :  { %p530_p0 = scmp.ne.s32.totalorder %s17_s13, %s529_s14  ;;  %p535_p2 = scmp.lt.s32.totalorder %s529_s14, %s529_s14 }
   0x7   :  { %p536_p3 = por %p535_p2, %p534_p1 }
   0x9   :  { %p537_p4 = pnand %p536_p3, %p530_p0 }
   0xb   :  { %540 = shalt.err (!%p537_p4)
}
   0xc   :  { %s588_s15 = smov 256   ;;  %s589_s16 = smov 16  }
   0xd   :  { %22 = dma.hbm_to_vmem [thread:$0]  %s687_s0, 6400, %s17_s13, [#allocation3], %s588_s15, %s588_s15, %s589_s16  }
   0xe   :  { %s590_s19 = smov [#allocation5]  }
   0xf   :  { %s28_s20 = sshll.u32 %s590_s19, 4  ;;  %s29_s20 = int_to_ptr.vmem [resolvable:$true] %s28_s20 }
  0x10   :  { %s549_s21 = scalar_lea.vmem %s29_s20, 8192  ;;  %p554_p6 = scmp.lt.s32.totalorder %s29_s20, %s29_s20 }
  0x11   :  { %p550_p5 = scmp.ne.s32.totalorder %s29_s20, %s549_s21  ;;  %p555_p7 = scmp.lt.s32.totalorder %s549_s21, %s549_s21 }
  0x13   :  { %p556_p8 = por %p555_p7, %p554_p6 }
  0x15   :  { %p557_p9 = pnand %p556_p8, %p550_p5 }
  0x17   :  { %560 = shalt.err (!%p557_p9)
}
  0x18   :  { %34 = dma.hbm_to_vmem [thread:$0]  %s688_s1, 8192, %s29_s20, [#allocation6], %s588_s15, %s588_s15, %s589_s16  }
  0x19   :  { %581 = dma.done.wait [#allocation3], 6400  }
  0x1a   :  { %582 = vsyncadd [#allocation3], 4294960896 }
  0x1b   :  { %583 = dma.done.wait [#allocation6], 8192  }
  0x1c   :  { %584 = vsyncadd [#allocation6], 4294959104  ;;  %v124_v0 = vld [vmem:[#allocation5 + $0xf8] sm:$0xff]  ;;  %v123_v1 = vld [vmem:[#allocation5 + $0xf0] sm:$0xff] }
  0x1d   :  { %v122_v2 = vld [vmem:[#allocation5 + $0xe8] sm:$0xff]  ;;  %169 = vmatprep.subr.mxu0 %v124_v0  ;;  %452 = vmatprep.subr.mxu1 %v124_v0  ;;  %v121_v3 = vld [vmem:[#allocation5 + $0xe0] sm:$0xff]  ;;  %v120_v4 = vld [vmem:[#allocation5 + $0xd8] sm:$0xff] }
  0x1e   :  { %170 = vmatpush1.msra.mxu0 %v123_v1  ;;  %484 = vmatpush1.msra.mxu1 %v123_v1  ;;  %v119_v5 = vld [vmem:[#allocation5 + $0xd0] sm:$0xff]  ;;  %v118_v6 = vld [vmem:[#allocation5 + $0xc8] sm:$0xff]  ;;  %v117_v7 = vld [vmem:[#allocation5 + $0xc0] sm:$0xff] }
  0x1f   :  { %171 = vmatprep.subr.mxu0 %v122_v2  ;;  %453 = vmatprep.subr.mxu1 %v122_v2  ;;  %v116_v8 = vld [vmem:[#allocation5 + $0xb8] sm:$0xff]  ;;  %v115_v9 = vld [vmem:[#allocation5 + $0xb0] sm:$0xff]  ;;  %v114_v10 = vld [vmem:[#allocation5 + $0xa8] sm:$0xff] }
  0x20   :  { %172 = vmatpush1.msra.mxu0 %v121_v3  ;;  %485 = vmatpush1.msra.mxu1 %v121_v3  ;;  %v113_v11 = vld [vmem:[#allocation5 + $0xa0] sm:$0xff]  ;;  %v112_v12 = vld [vmem:[#allocation5 + $0x98] sm:$0xff]  ;;  %v111_v13 = vld [vmem:[#allocation5 + $0x90] sm:$0xff] }
  0x21   :  { %173 = vmatprep.subr.mxu0 %v120_v4  ;;  %454 = vmatprep.subr.mxu1 %v120_v4  ;;  %v110_v14 = vld [vmem:[#allocation5 + $0x88] sm:$0xff]  ;;  %v109_v15 = vld [vmem:[#allocation5 + $0x80] sm:$0xff]  ;;  %v108_v16 = vld [vmem:[#allocation5 + $0x78] sm:$0xff] }
  0x22   :  { %174 = vmatpush1.msra.mxu0 %v119_v5  ;;  %486 = vmatpush1.msra.mxu1 %v119_v5  ;;  %v107_v17 = vld [vmem:[#allocation5 + $0x70] sm:$0xff]  ;;  %v106_v18 = vld [vmem:[#allocation5 + $0x68] sm:$0xff]  ;;  %v105_v19 = vld [vmem:[#allocation5 + $0x60] sm:$0xff] }
  0x23   :  { %175 = vmatprep.subr.mxu0 %v118_v6  ;;  %455 = vmatprep.subr.mxu1 %v118_v6  ;;  %v104_v20 = vld [vmem:[#allocation5 + $0x58] sm:$0xff]  ;;  %v103_v21 = vld [vmem:[#allocation5 + $0x50] sm:$0xff]  ;;  %v102_v22 = vld [vmem:[#allocation5 + $0x48] sm:$0xff] }
  0x24   :  { %176 = vmatpush1.msra.mxu0 %v117_v7  ;;  %487 = vmatpush1.msra.mxu1 %v117_v7  ;;  %v101_v23 = vld [vmem:[#allocation5 + $0x40] sm:$0xff]  ;;  %v100_v24 = vld [vmem:[#allocation5 + $0x38] sm:$0xff]  ;;  %v99_v25 = vld [vmem:[#allocation5 + $0x30] sm:$0xff] }
  0x25   :  { %177 = vmatprep.subr.mxu0 %v116_v8  ;;  %456 = vmatprep.subr.mxu1 %v116_v8  ;;  %v98_v26 = vld [vmem:[#allocation5 + $0x28] sm:$0xff]  ;;  %v97_v27 = vld [vmem:[#allocation5 + $0x20] sm:$0xff]  ;;  %v96_v28 = vld [vmem:[#allocation5 + $0x18] sm:$0xff] }
  0x26   :  { %178 = vmatpush1.msra.mxu0 %v115_v9  ;;  %488 = vmatpush1.msra.mxu1 %v115_v9  ;;  %v95_v29 = vld [vmem:[#allocation5 + $0x10] sm:$0xff]  ;;  %v94_v30 = vld [vmem:[#allocation5 + $0x8] sm:$0xff]  ;;  %v93_v31 = vld [vmem:[#allocation5] sm:$0xff] }
  0x27   :  { %179 = vmatprep.subr.mxu0 %v114_v10  ;;  %457 = vmatprep.subr.mxu1 %v114_v10  ;;  %v156_v32 = vld [vmem:[#allocation5 + $0x1f8] sm:$0xff]  ;;  %v155_v33 = vld [vmem:[#allocation5 + $0x1f0] sm:$0xff]  ;;  %v154_v34 = vld [vmem:[#allocation5 + $0x1e8] sm:$0xff] }
  0x28   :  { %180 = vmatpush1.msra.mxu0 %v113_v11  ;;  %489 = vmatpush1.msra.mxu1 %v113_v11  ;;  %v153_v35 = vld [vmem:[#allocation5 + $0x1e0] sm:$0xff]  ;;  %v152_v36 = vld [vmem:[#allocation5 + $0x1d8] sm:$0xff]  ;;  %v151_v37 = vld [vmem:[#allocation5 + $0x1d0] sm:$0xff] }
  0x29   :  { %181 = vmatprep.subr.mxu0 %v112_v12  ;;  %458 = vmatprep.subr.mxu1 %v112_v12  ;;  %v150_v38 = vld [vmem:[#allocation5 + $0x1c8] sm:$0xff]  ;;  %v149_v39 = vld [vmem:[#allocation5 + $0x1c0] sm:$0xff]  ;;  %v148_v40 = vld [vmem:[#allocation5 + $0x1b8] sm:$0xff] }
  0x2a   :  { %182 = vmatpush1.msra.mxu0 %v111_v13  ;;  %490 = vmatpush1.msra.mxu1 %v111_v13  ;;  %v147_v41 = vld [vmem:[#allocation5 + $0x1b0] sm:$0xff]  ;;  %v146_v42 = vld [vmem:[#allocation5 + $0x1a8] sm:$0xff]  ;;  %v145_v43 = vld [vmem:[#allocation5 + $0x1a0] sm:$0xff] }
  0x2b   :  { %183 = vmatprep.subr.mxu0 %v110_v14  ;;  %459 = vmatprep.subr.mxu1 %v110_v14  ;;  %v144_v44 = vld [vmem:[#allocation5 + $0x198] sm:$0xff]  ;;  %v143_v45 = vld [vmem:[#allocation5 + $0x190] sm:$0xff]  ;;  %v142_v46 = vld [vmem:[#allocation5 + $0x188] sm:$0xff] }
  0x2c   :  { %184 = vmatpush1.msra.mxu0 %v109_v15  ;;  %491 = vmatpush1.msra.mxu1 %v109_v15  ;;  %v141_v47 = vld [vmem:[#allocation5 + $0x180] sm:$0xff]  ;;  %v140_v48 = vld [vmem:[#allocation5 + $0x178] sm:$0xff]  ;;  %v139_v49 = vld [vmem:[#allocation5 + $0x170] sm:$0xff] }
  0x2d   :  { %185 = vmatprep.subr.mxu0 %v108_v16  ;;  %460 = vmatprep.subr.mxu1 %v108_v16  ;;  %v138_v50 = vld [vmem:[#allocation5 + $0x168] sm:$0xff]  ;;  %v137_v51 = vld [vmem:[#allocation5 + $0x160] sm:$0xff]  ;;  %v136_v52 = vld [vmem:[#allocation5 + $0x158] sm:$0xff] }
  0x2e   :  { %186 = vmatpush1.msra.mxu0 %v107_v17  ;;  %492 = vmatpush1.msra.mxu1 %v107_v17  ;;  %v135_v53 = vld [vmem:[#allocation5 + $0x150] sm:$0xff]  ;;  %v134_v54 = vld [vmem:[#allocation5 + $0x148] sm:$0xff]  ;;  %v133_v55 = vld [vmem:[#allocation5 + $0x140] sm:$0xff] }
  0x2f   :  { %187 = vmatprep.subr.mxu0 %v106_v18  ;;  %461 = vmatprep.subr.mxu1 %v106_v18  ;;  %v132_v56 = vld [vmem:[#allocation5 + $0x138] sm:$0xff]  ;;  %v131_v57 = vld [vmem:[#allocation5 + $0x130] sm:$0xff]  ;;  %v130_v58 = vld [vmem:[#allocation5 + $0x128] sm:$0xff] }
  0x30   :  { %188 = vmatpush1.msra.mxu0 %v105_v19  ;;  %493 = vmatpush1.msra.mxu1 %v105_v19  ;;  %v129_v59 = vld [vmem:[#allocation5 + $0x120] sm:$0xff]  ;;  %v128_v60 = vld [vmem:[#allocation5 + $0x118] sm:$0xff]  ;;  %v127_v61 = vld [vmem:[#allocation5 + $0x110] sm:$0xff] }
  0x31   :  { %189 = vmatprep.subr.mxu0 %v104_v20  ;;  %462 = vmatprep.subr.mxu1 %v104_v20  ;;  %v126_v62 = vld [vmem:[#allocation5 + $0x108] sm:$0xff]  ;;  %v44_v63 = vld [vmem:[#allocation2 + $0x8] sm:$0xff]  ;;  %v125_v0 = vld [vmem:[#allocation5 + $0x100] sm:$0xff] }
  0x32   :  { %190 = vmatpush1.msra.mxu0 %v103_v21  ;;  %494 = vmatpush1.msra.mxu1 %v103_v21  ;;  %v43_v1 = vld [vmem:[#allocation2] sm:$0xff]  ;;  %v70_v2 = vld [vmem:[#allocation2 + $0xd8] sm:$0xff]  ;;  %v69_v4 = vld [vmem:[#allocation2 + $0xd0] sm:$0xff] }
  0x33   :  { %191 = vmatprep.subr.mxu0 %v102_v22  ;;  %463 = vmatprep.subr.mxu1 %v102_v22  ;;  %v46_v3 = vld [vmem:[#allocation2 + $0x18] sm:$0xff]  ;;  %v72_v5 = vld [vmem:[#allocation2 + $0xe8] sm:$0xff]  ;;  %v45_v6 = vld [vmem:[#allocation2 + $0x10] sm:$0xff] }
  0x34   :  { %192 = vmatpush1.msra.mxu0 %v101_v23  ;;  %495 = vmatpush1.msra.mxu1 %v101_v23  ;;  %v48_v7 = vld [vmem:[#allocation2 + $0x28] sm:$0xff]  ;;  %v71_v8 = vld [vmem:[#allocation2 + $0xe0] sm:$0xff]  ;;  %v74_v9 = vld [vmem:[#allocation2 + $0xf8] sm:$0xff] }
  0x35   :  { %193 = vmatprep.subr.mxu0 %v100_v24  ;;  %464 = vmatprep.subr.mxu1 %v100_v24  ;;  %v47_v10 = vld [vmem:[#allocation2 + $0x20] sm:$0xff]  ;;  %v50_v11 = vld [vmem:[#allocation2 + $0x38] sm:$0xff]  ;;  %v73_v12 = vld [vmem:[#allocation2 + $0xf0] sm:$0xff] }
  0x36   :  { %194 = vmatpush1.msra.mxu0 %v99_v25  ;;  %496 = vmatpush1.msra.mxu1 %v99_v25  ;;  %v76_v13 = vld [vmem:[#allocation2 + $0x108] sm:$0xff]  ;;  %v49_v14 = vld [vmem:[#allocation2 + $0x30] sm:$0xff]  ;;  %v75_v16 = vld [vmem:[#allocation2 + $0x100] sm:$0xff] }
  0x37   :  { %195 = vmatprep.subr.mxu0 %v98_v26  ;;  %465 = vmatprep.subr.mxu1 %v98_v26  ;;  %v52_v15 = vld [vmem:[#allocation2 + $0x48] sm:$0xff]  ;;  %v78_v17 = vld [vmem:[#allocation2 + $0x118] sm:$0xff]  ;;  %v51_v18 = vld [vmem:[#allocation2 + $0x40] sm:$0xff] }
  0x38   :  { %196 = vmatpush1.msra.mxu0 %v97_v27  ;;  %497 = vmatpush1.msra.mxu1 %v97_v27  ;;  %v54_v19 = vld [vmem:[#allocation2 + $0x58] sm:$0xff]  ;;  %v77_v20 = vld [vmem:[#allocation2 + $0x110] sm:$0xff]  ;;  %v80_v21 = vld [vmem:[#allocation2 + $0x128] sm:$0xff] }
  0x39   :  { %197 = vmatprep.subr.mxu0 %v96_v28  ;;  %466 = vmatprep.subr.mxu1 %v96_v28  ;;  %v53_v22 = vld [vmem:[#allocation2 + $0x50] sm:$0xff]  ;;  %v56_v23 = vld [vmem:[#allocation2 + $0x68] sm:$0xff]  ;;  %v79_v24 = vld [vmem:[#allocation2 + $0x120] sm:$0xff] }
  0x3a   :  { %198 = vmatpush1.msra.mxu0 %v95_v29  ;;  %498 = vmatpush1.msra.mxu1 %v95_v29  ;;  %v82_v25 = vld [vmem:[#allocation2 + $0x138] sm:$0xff]  ;;  %v55_v26 = vld [vmem:[#allocation2 + $0x60] sm:$0xff]  ;;  %v81_v28 = vld [vmem:[#allocation2 + $0x130] sm:$0xff] }
  0x3b   :  { %199 = vmatprep.subr.mxu0 %v94_v30  ;;  %467 = vmatprep.subr.mxu1 %v94_v30  ;;  %v58_v27 = vld [vmem:[#allocation2 + $0x78] sm:$0xff]  ;;  %v84_v29 = vld [vmem:[#allocation2 + $0x148] sm:$0xff]  ;;  %v57_v30 = vld [vmem:[#allocation2 + $0x70] sm:$0xff] }
  0x3c   :  { %200 = vmatpush1.msra.mxu0 %v93_v31  ;;  %499 = vmatpush1.msra.mxu1 %v93_v31  ;;  %v60_v31 = vld [vmem:[#allocation2 + $0x88] sm:$0xff] }
  0x3d   :  { %201 = vmatprep.subr.mxu0 %v156_v32  ;;  %468 = vmatprep.subr.mxu1 %v156_v32  ;;  %v83_v32 = vld [vmem:[#allocation2 + $0x140] sm:$0xff] }
  0x3e   :  { %202 = vmatpush2.msra.mxu0 %v155_v33  ;;  %500 = vmatpush2.msra.mxu1 %v155_v33  ;;  %v86_v33 = vld [vmem:[#allocation2 + $0x158] sm:$0xff] }
  0x3f   :  { %203 = vmatprep.subr.mxu0 %v154_v34  ;;  %469 = vmatprep.subr.mxu1 %v154_v34  ;;  %v59_v34 = vld [vmem:[#allocation2 + $0x80] sm:$0xff] }
  0x40   :  { %204 = vmatpush2.msra.mxu0 %v153_v35  ;;  %501 = vmatpush2.msra.mxu1 %v153_v35  ;;  %v62_v35 = vld [vmem:[#allocation2 + $0x98] sm:$0xff] }
  0x41   :  { %205 = vmatprep.subr.mxu0 %v152_v36  ;;  %470 = vmatprep.subr.mxu1 %v152_v36  ;;  %v85_v36 = vld [vmem:[#allocation2 + $0x150] sm:$0xff] }
  0x42   :  { %206 = vmatpush2.msra.mxu0 %v151_v37  ;;  %502 = vmatpush2.msra.mxu1 %v151_v37  ;;  %v88_v37 = vld [vmem:[#allocation2 + $0x168] sm:$0xff] }
  0x43   :  { %207 = vmatprep.subr.mxu0 %v150_v38  ;;  %471 = vmatprep.subr.mxu1 %v150_v38  ;;  %v61_v38 = vld [vmem:[#allocation2 + $0x90] sm:$0xff] }
  0x44   :  { %208 = vmatpush2.msra.mxu0 %v149_v39  ;;  %503 = vmatpush2.msra.mxu1 %v149_v39  ;;  %v64_v39 = vld [vmem:[#allocation2 + $0xa8] sm:$0xff] }
  0x45   :  { %209 = vmatprep.subr.mxu0 %v148_v40  ;;  %472 = vmatprep.subr.mxu1 %v148_v40  ;;  %v87_v40 = vld [vmem:[#allocation2 + $0x160] sm:$0xff] }
  0x46   :  { %210 = vmatpush2.msra.mxu0 %v147_v41  ;;  %504 = vmatpush2.msra.mxu1 %v147_v41  ;;  %v90_v41 = vld [vmem:[#allocation2 + $0x178] sm:$0xff] }
  0x47   :  { %211 = vmatprep.subr.mxu0 %v146_v42  ;;  %473 = vmatprep.subr.mxu1 %v146_v42  ;;  %v63_v42 = vld [vmem:[#allocation2 + $0xa0] sm:$0xff] }
  0x48   :  { %212 = vmatpush2.msra.mxu0 %v145_v43  ;;  %505 = vmatpush2.msra.mxu1 %v145_v43  ;;  %v66_v43 = vld [vmem:[#allocation2 + $0xb8] sm:$0xff] }
  0x49   :  { %213 = vmatprep.subr.mxu0 %v144_v44  ;;  %474 = vmatprep.subr.mxu1 %v144_v44  ;;  %v89_v44 = vld [vmem:[#allocation2 + $0x170] sm:$0xff] }
  0x4a   :  { %214 = vmatpush2.msra.mxu0 %v143_v45  ;;  %506 = vmatpush2.msra.mxu1 %v143_v45  ;;  %v92_v45 = vld [vmem:[#allocation2 + $0x188] sm:$0xff] }
  0x4b   :  { %215 = vmatprep.subr.mxu0 %v142_v46  ;;  %475 = vmatprep.subr.mxu1 %v142_v46  ;;  %v65_v46 = vld [vmem:[#allocation2 + $0xb0] sm:$0xff] }
  0x4c   :  { %216 = vmatpush2.msra.mxu0 %v141_v47  ;;  %507 = vmatpush2.msra.mxu1 %v141_v47  ;;  %v68_v47 = vld [vmem:[#allocation2 + $0xc8] sm:$0xff] }
  0x4d   :  { %217 = vmatprep.subr.mxu0 %v140_v48  ;;  %476 = vmatprep.subr.mxu1 %v140_v48  ;;  %v91_v48 = vld [vmem:[#allocation2 + $0x180] sm:$0xff] }
  0x4e   :  { %218 = vmatpush2.msra.mxu0 %v139_v49  ;;  %508 = vmatpush2.msra.mxu1 %v139_v49  ;;  %v67_v49 = vld [vmem:[#allocation2 + $0xc0] sm:$0xff] }
  0x4f   :  { %219 = vmatprep.subr.mxu0 %v138_v50  ;;  %477 = vmatprep.subr.mxu1 %v138_v50  ;;  %v159_v50 = vlaneseq }
  0x50   :  { %220 = vmatpush2.msra.mxu0 %v137_v51  ;;  %509 = vmatpush2.msra.mxu1 %v137_v51 }
  0x51   :  { %221 = vmatprep.subr.mxu0 %v136_v52  ;;  %478 = vmatprep.subr.mxu1 %v136_v52  ;;  %v160_v51 = vshrl.u32 %v159_v50, 7 }
  0x52   :  { %222 = vmatpush2.msra.mxu0 %v135_v53  ;;  %510 = vmatpush2.msra.mxu1 %v135_v53  ;;  %v157_v53 = vld [vmem:[%s689_s2] sm:$0x3]  ;;  %s591_s2 = smov [#allocation7]  }
  0x53   :  { %223 = vmatprep.subr.mxu0 %v134_v54  ;;  %479 = vmatprep.subr.mxu1 %v134_v54  ;;  %v161_v52 = vsub.s32 0, %v160_v51  ;;  %v165_v54 = vsub.s32 1, %v160_v51  ;;  %s439_s24 = sshll.u32 %s591_s2, 4  ;;  %s440_s24 = int_to_ptr.vmem [resolvable:$true] %s439_s24 }
  0x54   :  { %224 = vmatpush2.msra.mxu0 %v133_v55  ;;  %511 = vmatpush2.msra.mxu1 %v133_v55  ;;  %s561_s25 = scalar_lea.vmem %s440_s24, 6400  ;;  %p566_p11 = scmp.lt.s32.totalorder %s440_s24, %s440_s24 }
  0x55   :  { %225 = vmatprep.subr.mxu0 %v132_v56  ;;  %480 = vmatprep.subr.mxu1 %v132_v56  ;;  %v627_v55 = vrot.slane %v157_v53, %v161_v52  ;;  %v629_v56 = vrot.slane %v157_v53, %v165_v54  ;;  %p562_p10 = scmp.ne.s32.totalorder %s440_s24, %s561_s25  ;;  %p567_p12 = scmp.lt.s32.totalorder %s561_s25, %s561_s25 }
  0x56   :  { %226 = vmatpush2.msra.mxu0 %v131_v57  ;;  %512 = vmatpush2.msra.mxu1 %v131_v57 }
  0x57   :  { %227 = vmatprep.subr.mxu0 %v130_v58  ;;  %481 = vmatprep.subr.mxu1 %v130_v58  ;;  %p568_p13 = por %p567_p12, %p566_p11 }
  0x58   :  { %228 = vmatpush2.msra.mxu0 %v129_v59  ;;  %513 = vmatpush2.msra.mxu1 %v129_v59 }
  0x59   :  { %229 = vmatprep.subr.mxu0 %v128_v60  ;;  %482 = vmatprep.subr.mxu1 %v128_v60  ;;  %p569_p0 = pnand %p568_p13, %p562_p10 }
  0x5a   :  { %230 = vmatpush2.msra.mxu0 %v127_v61  ;;  %514 = vmatpush2.msra.mxu1 %v127_v61 }
  0x5b   :  { %231 = vmatprep.subr.mxu0 %v126_v62  ;;  %233 = vmatprep.mubr.f32.mxu0 %v44_v63 }
  0x5c   :  { %232 = vmatpush2.msra.mxu0 %v125_v0  ;;  %483 = vmatprep.subr.mxu1 %v126_v62 }
  0x5d   :  { %234 = vmatmul.mubr.f32.vlgmr.msra.gmra.mxu0 %v43_v1  ;;  %515 = vmatpush2.msra.mxu1 %v125_v0 }
  0x5e   :  { %311 = vmatprep.mubr.f32.mxu1 %v70_v2  ;;  %239 = vmatprep.mubr.f32.mxu0 %v46_v3 }
  0x5f   :  { %312 = vmatmul.mubr.f32.vlgmr.msra.gmra.mxu1 %v69_v4 }
  0x60   :  { %317 = vmatprep.mubr.f32.mxu1 %v72_v5 }
  0x61   :  { %240 = vmatmul.mubr.f32.gmra.mxu0 %v45_v6 }
  0x62   :  { %245 = vmatprep.mubr.f32.mxu0 %v48_v7 }
  0x63   :  { %318 = vmatmul.mubr.f32.gmra.mxu1 %v71_v8 }
  0x64   :  { %323 = vmatprep.mubr.f32.mxu1 %v74_v9 }
  0x65   :  { %246 = vmatmul.mubr.f32.gmra.mxu0 %v47_v10 }
  0x66   :  { %251 = vmatprep.mubr.f32.mxu0 %v50_v11 }
  0x67   :  { %324 = vmatmul.mubr.f32.gmra.mxu1 %v73_v12 }
  0x68   :  { %329 = vmatprep.mubr.f32.mxu1 %v76_v13 }
  0x69   :  { %252 = vmatmul.mubr.f32.gmra.mxu0 %v49_v14 }
  0x6a   :  { %257 = vmatprep.mubr.f32.mxu0 %v52_v15 }
  0x6b   :  { %330 = vmatmul.mubr.f32.gmra.mxu1 %v75_v16 }
  0x6c   :  { %335 = vmatprep.mubr.f32.mxu1 %v78_v17 }
  0x6d   :  { %258 = vmatmul.mubr.f32.gmra.mxu0 %v51_v18 }
  0x6e   :  { %263 = vmatprep.mubr.f32.mxu0 %v54_v19 }
  0x6f   :  { %336 = vmatmul.mubr.f32.gmra.mxu1 %v77_v20 }
  0x70   :  { %341 = vmatprep.mubr.f32.mxu1 %v80_v21 }
  0x71   :  { %264 = vmatmul.mubr.f32.gmra.mxu0 %v53_v22 }
  0x72   :  { %269 = vmatprep.mubr.f32.mxu0 %v56_v23 }
  0x73   :  { %342 = vmatmul.mubr.f32.gmra.mxu1 %v79_v24 }
  0x74   :  { %347 = vmatprep.mubr.f32.mxu1 %v82_v25 }
  0x75   :  { %270 = vmatmul.mubr.f32.gmra.mxu0 %v55_v26 }
  0x76   :  { %275 = vmatprep.mubr.f32.mxu0 %v58_v27 }
  0x77   :  { %348 = vmatmul.mubr.f32.gmra.mxu1 %v81_v28 }
  0x78   :  { %353 = vmatprep.mubr.f32.mxu1 %v84_v29 }
  0x79   :  { %276 = vmatmul.mubr.f32.gmra.mxu0 %v57_v30 }
  0x7a   :  { %281 = vmatprep.mubr.f32.mxu0 %v60_v31 }
  0x7b   :  { %354 = vmatmul.mubr.f32.gmra.mxu1 %v83_v32 }
  0x7c   :  { %359 = vmatprep.mubr.f32.mxu1 %v86_v33 }
  0x7d   :  { %282 = vmatmul.mubr.f32.gmra.mxu0 %v59_v34 }
  0x7e   :  { %287 = vmatprep.mubr.f32.mxu0 %v62_v35 }
  0x7f   :  { %360 = vmatmul.mubr.f32.gmra.mxu1 %v85_v36 }
  0x80   :  { %365 = vmatprep.mubr.f32.mxu1 %v88_v37 }
  0x81   :  { %288 = vmatmul.mubr.f32.gmra.mxu0 %v61_v38 }
  0x82   :  { %293 = vmatprep.mubr.f32.mxu0 %v64_v39 }
  0x83   :  { %366 = vmatmul.mubr.f32.gmra.mxu1 %v87_v40 }
  0x84   :  { %371 = vmatprep.mubr.f32.mxu1 %v90_v41 }
  0x85   :  { %294 = vmatmul.mubr.f32.gmra.mxu0 %v63_v42 }
  0x86   :  { %299 = vmatprep.mubr.f32.mxu0 %v66_v43 }
  0x87   :  { %372 = vmatmul.mubr.f32.gmra.mxu1 %v89_v44 }
  0x88   :  { %377 = vmatprep.mubr.f32.mxu1 %v92_v45 }
  0x89   :  { %300 = vmatmul.mubr.f32.gmra.mxu0 %v65_v46 }
  0x8a   :  { %305 = vmatprep.mubr.f32.mxu0 %v68_v47 }
  0x8b   :  { %378 = vmatmul.mubr.f32.gmra.mxu1 %v91_v48 }
  0x8d   :  { %306 = vmatmul.mubr.f32.gmra.mxu0 %v67_v49 }
 0x11d   :  { %v235_v57 = vpop.f32.mrf.mxu0 }
 0x11e   :  { %v236_v58 = vadd.f32 %v235_v57, %v627_v55 }
 0x11f   :  { %v237_v59 = vpop.f32.mrf.mxu0  ;;  %v313_v60 = vpop.f32.mrf.mxu1 }
 0x120   :  { %384 = vst [vmem:[#allocation7] sm:$0xff] %v236_v58  ;;  %v238_v61 = vadd.f32 %v237_v59, %v629_v56  ;;  %v314_v62 = vadd.f32 %v313_v60, %v627_v55 }
 0x121   :  { %v241_v63 = vpop.f32.mrf.mxu0  ;;  %v315_v0 = vpop.f32.mrf.mxu1 }
 0x122   :  { %385 = vst [vmem:[#allocation7 + $0x8] sm:$0xff] %v238_v61  ;;  %410 = vst [vmem:[#allocation7 + $0xd0] sm:$0xff] %v314_v62  ;;  %v242_v1 = vadd.f32 %v241_v63, %v627_v55  ;;  %v316_v2 = vadd.f32 %v315_v0, %v629_v56 }
 0x123   :  { %v243_v3 = vpop.f32.mrf.mxu0  ;;  %v319_v4 = vpop.f32.mrf.mxu1 }
 0x124   :  { %386 = vst [vmem:[#allocation7 + $0x10] sm:$0xff] %v242_v1  ;;  %411 = vst [vmem:[#allocation7 + $0xd8] sm:$0xff] %v316_v2  ;;  %v244_v5 = vadd.f32 %v243_v3, %v629_v56  ;;  %v320_v6 = vadd.f32 %v319_v4, %v627_v55 }
 0x125   :  { %v247_v7 = vpop.f32.mrf.mxu0  ;;  %v321_v8 = vpop.f32.mrf.mxu1 }
 0x126   :  { %387 = vst [vmem:[#allocation7 + $0x18] sm:$0xff] %v244_v5  ;;  %412 = vst [vmem:[#allocation7 + $0xe0] sm:$0xff] %v320_v6  ;;  %v248_v9 = vadd.f32 %v247_v7, %v627_v55  ;;  %v322_v10 = vadd.f32 %v321_v8, %v629_v56 }
 0x127   :  { %v249_v11 = vpop.f32.mrf.mxu0  ;;  %v325_v12 = vpop.f32.mrf.mxu1 }
 0x128   :  { %388 = vst [vmem:[#allocation7 + $0x20] sm:$0xff] %v248_v9  ;;  %413 = vst [vmem:[#allocation7 + $0xe8] sm:$0xff] %v322_v10  ;;  %v250_v13 = vadd.f32 %v249_v11, %v629_v56  ;;  %v326_v14 = vadd.f32 %v325_v12, %v627_v55 }
 0x129   :  { %v253_v15 = vpop.f32.mrf.mxu0  ;;  %v327_v16 = vpop.f32.mrf.mxu1 }
 0x12a   :  { %389 = vst [vmem:[#allocation7 + $0x28] sm:$0xff] %v250_v13  ;;  %414 = vst [vmem:[#allocation7 + $0xf0] sm:$0xff] %v326_v14  ;;  %v254_v17 = vadd.f32 %v253_v15, %v627_v55  ;;  %v328_v18 = vadd.f32 %v327_v16, %v629_v56 }
 0x12b   :  { %v255_v19 = vpop.f32.mrf.mxu0  ;;  %v331_v20 = vpop.f32.mrf.mxu1 }
 0x12c   :  { %390 = vst [vmem:[#allocation7 + $0x30] sm:$0xff] %v254_v17  ;;  %415 = vst [vmem:[#allocation7 + $0xf8] sm:$0xff] %v328_v18  ;;  %v256_v21 = vadd.f32 %v255_v19, %v629_v56  ;;  %v332_v22 = vadd.f32 %v331_v20, %v627_v55 }
 0x12d   :  { %v259_v23 = vpop.f32.mrf.mxu0  ;;  %v333_v24 = vpop.f32.mrf.mxu1 }
 0x12e   :  { %391 = vst [vmem:[#allocation7 + $0x38] sm:$0xff] %v256_v21  ;;  %416 = vst [vmem:[#allocation7 + $0x100] sm:$0xff] %v332_v22  ;;  %v260_v25 = vadd.f32 %v259_v23, %v627_v55  ;;  %v334_v26 = vadd.f32 %v333_v24, %v629_v56 }
 0x12f   :  { %v261_v27 = vpop.f32.mrf.mxu0  ;;  %v337_v28 = vpop.f32.mrf.mxu1 }
 0x130   :  { %392 = vst [vmem:[#allocation7 + $0x40] sm:$0xff] %v260_v25  ;;  %417 = vst [vmem:[#allocation7 + $0x108] sm:$0xff] %v334_v26  ;;  %v262_v29 = vadd.f32 %v261_v27, %v629_v56  ;;  %v338_v30 = vadd.f32 %v337_v28, %v627_v55 }
 0x131   :  { %v265_v31 = vpop.f32.mrf.mxu0  ;;  %v339_v32 = vpop.f32.mrf.mxu1 }
 0x132   :  { %393 = vst [vmem:[#allocation7 + $0x48] sm:$0xff] %v262_v29  ;;  %418 = vst [vmem:[#allocation7 + $0x110] sm:$0xff] %v338_v30  ;;  %v266_v33 = vadd.f32 %v265_v31, %v627_v55  ;;  %v340_v34 = vadd.f32 %v339_v32, %v629_v56 }
 0x133   :  { %v267_v35 = vpop.f32.mrf.mxu0  ;;  %v343_v36 = vpop.f32.mrf.mxu1 }
 0x134   :  { %394 = vst [vmem:[#allocation7 + $0x50] sm:$0xff] %v266_v33  ;;  %419 = vst [vmem:[#allocation7 + $0x118] sm:$0xff] %v340_v34  ;;  %v268_v37 = vadd.f32 %v267_v35, %v629_v56  ;;  %v344_v38 = vadd.f32 %v343_v36, %v627_v55 }
 0x135   :  { %v271_v39 = vpop.f32.mrf.mxu0  ;;  %v345_v40 = vpop.f32.mrf.mxu1 }
 0x136   :  { %395 = vst [vmem:[#allocation7 + $0x58] sm:$0xff] %v268_v37  ;;  %420 = vst [vmem:[#allocation7 + $0x120] sm:$0xff] %v344_v38  ;;  %v272_v41 = vadd.f32 %v271_v39, %v627_v55  ;;  %v346_v42 = vadd.f32 %v345_v40, %v629_v56 }
 0x137   :  { %v273_v43 = vpop.f32.mrf.mxu0  ;;  %v349_v44 = vpop.f32.mrf.mxu1 }
 0x138   :  { %396 = vst [vmem:[#allocation7 + $0x60] sm:$0xff] %v272_v41  ;;  %421 = vst [vmem:[#allocation7 + $0x128] sm:$0xff] %v346_v42  ;;  %v274_v45 = vadd.f32 %v273_v43, %v629_v56  ;;  %v350_v46 = vadd.f32 %v349_v44, %v627_v55 }
 0x139   :  { %v277_v47 = vpop.f32.mrf.mxu0  ;;  %v351_v48 = vpop.f32.mrf.mxu1 }
 0x13a   :  { %397 = vst [vmem:[#allocation7 + $0x68] sm:$0xff] %v274_v45  ;;  %422 = vst [vmem:[#allocation7 + $0x130] sm:$0xff] %v350_v46  ;;  %v278_v49 = vadd.f32 %v277_v47, %v627_v55  ;;  %v352_v50 = vadd.f32 %v351_v48, %v629_v56 }
 0x13b   :  { %v279_v51 = vpop.f32.mrf.mxu0  ;;  %v355_v52 = vpop.f32.mrf.mxu1 }
 0x13c   :  { %398 = vst [vmem:[#allocation7 + $0x70] sm:$0xff] %v278_v49  ;;  %423 = vst [vmem:[#allocation7 + $0x138] sm:$0xff] %v352_v50  ;;  %v280_v53 = vadd.f32 %v279_v51, %v629_v56  ;;  %v356_v54 = vadd.f32 %v355_v52, %v627_v55 }
 0x13d   :  { %v283_v57 = vpop.f32.mrf.mxu0  ;;  %v357_v58 = vpop.f32.mrf.mxu1 }
 0x13e   :  { %399 = vst [vmem:[#allocation7 + $0x78] sm:$0xff] %v280_v53  ;;  %424 = vst [vmem:[#allocation7 + $0x140] sm:$0xff] %v356_v54  ;;  %v284_v59 = vadd.f32 %v283_v57, %v627_v55  ;;  %v358_v60 = vadd.f32 %v357_v58, %v629_v56 }
 0x13f   :  { %v285_v61 = vpop.f32.mrf.mxu0  ;;  %v361_v62 = vpop.f32.mrf.mxu1 }
 0x140   :  { %400 = vst [vmem:[#allocation7 + $0x80] sm:$0xff] %v284_v59  ;;  %425 = vst [vmem:[#allocation7 + $0x148] sm:$0xff] %v358_v60  ;;  %v286_v63 = vadd.f32 %v285_v61, %v629_v56  ;;  %v362_v0 = vadd.f32 %v361_v62, %v627_v55 }
 0x141   :  { %v289_v1 = vpop.f32.mrf.mxu0  ;;  %v363_v2 = vpop.f32.mrf.mxu1 }
 0x142   :  { %401 = vst [vmem:[#allocation7 + $0x88] sm:$0xff] %v286_v63  ;;  %426 = vst [vmem:[#allocation7 + $0x150] sm:$0xff] %v362_v0  ;;  %v290_v3 = vadd.f32 %v289_v1, %v627_v55  ;;  %v364_v4 = vadd.f32 %v363_v2, %v629_v56 }
 0x143   :  { %v291_v5 = vpop.f32.mrf.mxu0  ;;  %v367_v6 = vpop.f32.mrf.mxu1 }
 0x144   :  { %402 = vst [vmem:[#allocation7 + $0x90] sm:$0xff] %v290_v3  ;;  %427 = vst [vmem:[#allocation7 + $0x158] sm:$0xff] %v364_v4  ;;  %v292_v7 = vadd.f32 %v291_v5, %v629_v56  ;;  %v368_v8 = vadd.f32 %v367_v6, %v627_v55 }
 0x145   :  { %v295_v9 = vpop.f32.mrf.mxu0  ;;  %v369_v10 = vpop.f32.mrf.mxu1 }
 0x146   :  { %403 = vst [vmem:[#allocation7 + $0x98] sm:$0xff] %v292_v7  ;;  %428 = vst [vmem:[#allocation7 + $0x160] sm:$0xff] %v368_v8  ;;  %v296_v11 = vadd.f32 %v295_v9, %v627_v55  ;;  %v370_v12 = vadd.f32 %v369_v10, %v629_v56 }
 0x147   :  { %v297_v13 = vpop.f32.mrf.mxu0  ;;  %v373_v14 = vpop.f32.mrf.mxu1 }
 0x148   :  { %404 = vst [vmem:[#allocation7 + $0xa0] sm:$0xff] %v296_v11  ;;  %429 = vst [vmem:[#allocation7 + $0x168] sm:$0xff] %v370_v12  ;;  %v298_v15 = vadd.f32 %v297_v13, %v629_v56  ;;  %v374_v16 = vadd.f32 %v373_v14, %v627_v55 }
 0x149   :  { %v301_v17 = vpop.f32.mrf.mxu0  ;;  %v375_v18 = vpop.f32.mrf.mxu1 }
 0x14a   :  { %405 = vst [vmem:[#allocation7 + $0xa8] sm:$0xff] %v298_v15  ;;  %430 = vst [vmem:[#allocation7 + $0x170] sm:$0xff] %v374_v16  ;;  %v302_v19 = vadd.f32 %v301_v17, %v627_v55  ;;  %v376_v20 = vadd.f32 %v375_v18, %v629_v56 }
 0x14b   :  { %v303_v21 = vpop.f32.mrf.mxu0  ;;  %v379_v22 = vpop.f32.mrf.mxu1 }
 0x14c   :  { %406 = vst [vmem:[#allocation7 + $0xb0] sm:$0xff] %v302_v19  ;;  %431 = vst [vmem:[#allocation7 + $0x178] sm:$0xff] %v376_v20  ;;  %v304_v23 = vadd.f32 %v303_v21, %v629_v56  ;;  %v380_v24 = vadd.f32 %v379_v22, %v627_v55 }
 0x14d   :  { %v307_v25 = vpop.f32.mrf.mxu0  ;;  %v381_v26 = vpop.f32.mrf.mxu1 }
 0x14e   :  { %407 = vst [vmem:[#allocation7 + $0xb8] sm:$0xff] %v304_v23  ;;  %432 = vst [vmem:[#allocation7 + $0x180] sm:$0xff] %v380_v24  ;;  %v308_v27 = vadd.f32 %v307_v25, %v627_v55  ;;  %v382_v28 = vadd.f32 %v381_v26, %v629_v56 }
 0x14f   :  { %v309_v29 = vpop.f32.mrf.mxu0 }
 0x150   :  { %408 = vst [vmem:[#allocation7 + $0xc0] sm:$0xff] %v308_v27  ;;  %433 = vst [vmem:[#allocation7 + $0x188] sm:$0xff] %v382_v28  ;;  %v310_v30 = vadd.f32 %v309_v29, %v629_v56 }
 0x152   :  { %409 = vst [vmem:[#allocation7 + $0xc8] sm:$0xff] %v310_v30 }
 0x153   :  { %572 = shalt.err (!%p569_p0)
}
 0x154   :  { %445 = dma.vmem_to_hbm [thread:$0]  %s440_s24, 6400, %s690_s3, [#allocation4], %s588_s15, %s588_s15, %s589_s16  }
 0x155   :  { %585 = dma.done.wait [#allocation4], 6400  }
 0x156   :  { %586 = vsyncadd [#allocation4], 4294960896 }
 0x157   :  { %449 = vsyncpa [#allocation3], 1 }
 0x158   :  { %450 = vsyncpa [#allocation6], 1 }
 0x159   :  { %451 = vsyncpa [#allocation4], 1 }

</bundles_post_ra>
